<compile_context>
chip_gen: v6e
topology: v6e:2x2x1
jax: 0.10.0
libtpu: 0.0.40
codegen_flags: <defaults>
</compile_context>

<pallas_src>
import math

import jax
import jax.numpy as jnp
from jax import lax
from jax.experimental import pallas as pl
from jax.experimental.pallas import tpu as pltpu


# ----------------------------------------------------------------------------
# Pallas kernel: block-sparse masked linear
#   out[q, k] = qmask[q] * kmask[k] * (x[q] . W[k] + b[k])
# ----------------------------------------------------------------------------
def _masked_linear_kernel(qact_ref, jact_ref, imap_ref, jmap_ref,   # SMEM scalar prefetch
                          x_ref, w_ref, b_ref, qm_ref, km_ref,      # VMEM input tiles
                          o_ref,                                    # VMEM output tile
                          acc_ref):                                 # f32 scratch accumulator
    i = pl.program_id(0)
    j = pl.program_id(1)
    k = pl.program_id(2)
    last_k = pl.num_programs(2) - 1

    active = jnp.logical_and(qact_ref[i] > 0, jact_ref[j] > 0)

    # Inactive (query-block x key-block) tiles: the masks force the result to
    # zero, so just write zeros once and skip MXU + finalize work entirely.
    @pl.when(jnp.logical_and(k == 0, jnp.logical_not(active)))
    def _():
        o_ref[...] = jnp.zeros_like(o_ref)

    @pl.when(jnp.logical_and(k == 0, active))
    def _():
        acc_ref[...] = jnp.zeros_like(acc_ref)

    @pl.when(active)
    def _():
        # Canonical (m,k)x(k,n) bf16 MXU matmul, f32 accumulation in scratch.
        # Operands were pre-cast to bf16 in the wrapper (no per-tile casts).
        acc_ref[...] += jnp.dot(x_ref[...], w_ref[...],
                                preferred_element_type=jnp.float32)

    @pl.when(jnp.logical_and(k == last_k, active))
    def _():
        out = (acc_ref[...] + b_ref[...]) * qm_ref[...] * km_ref[...]
        o_ref[...] = out.astype(o_ref.dtype)


# ----------------------------------------------------------------------------
# Tiling / VMEM helpers
# ----------------------------------------------------------------------------
def _pick_tile(dim, cap, unit):
    """Largest tile <= cap that divides dim and is a multiple of `unit`;
    falls back to the full dim (always a legal block)."""
    if dim <= cap:
        return dim
    t = (cap // unit) * unit
    while t >= unit:
        if dim % t == 0:
            return t
        t -= unit
    # No (8,128)-aligned divisor <= cap exists: the full dim is the only legal
    # block shape for this axis.
    return dim


def _vmem_capacity_bytes():
    """Trace-time VMEM capacity query with a conservative (v7x) fallback."""
    try:
        info = pltpu.get_tpu_info()
        for attr in ("vmem_capacity_bytes", "vmem_size_bytes", "vmem_bytes"):
            v = getattr(info, attr, None)
            if v:
                return int(v)
    except Exception:
        pass
    return 64 << 20


def _vmem_limit_bytes(tm, tn, tk, out_itemsize, cap_bytes):
    """Explicit budget: 2x double-buffered bf16 x/W tiles, double-buffered
    output block, f32 scratch accumulator, small bias/mask tiles + margin."""
    x_bytes = 2 * tm * tk * 2
    w_bytes = 2 * tk * tn * 2
    o_bytes = 2 * tm * tn * out_itemsize
    acc_bytes = tm * tn * 4
    small = 2 * (2 * tn * 4 + tm * 4)          # bias, kmask, qmask (f32)
    need = x_bytes + w_bytes + o_bytes + acc_bytes + small + (4 << 20)
    return int(min(max(need, 16 << 20), cap_bytes))


def masked_linear(x_bf, w_t_bf, bias2d, qmask, kmask,
                  qact, jact, imap, jmap, *, tm, tn, tk, out_dtype, vmem_limit):
    n, d_in = x_bf.shape
    d_out = w_t_bf.shape[1]
    n_i, n_j, n_k = n // tm, d_out // tn, d_in // tk

    return pl.pallas_call(
        _masked_linear_kernel,
        out_shape=jax.ShapeDtypeStruct((n, d_out), out_dtype),
        grid_spec=pltpu.PrefetchScalarGridSpec(
            num_scalar_prefetch=4,
            grid=(n_i, n_j, n_k),
            in_specs=[
                # x (bf16, n x d_in): inactive i-blocks alias the last active
                # one so their DMA is elided when n_k == 1.
                pl.BlockSpec((tm, tk), lambda i, j, k, qa, ja, im, jm: (im[i], k)),
                # W^T (bf16, d_in x d_out): inactive j-blocks alias the last
                # active one (weight DMA skipped; compute is gated off anyway).
                pl.BlockSpec((tk, tn), lambda i, j, k, qa, ja, im, jm: (k, jm[j])),
                # bias: (1, d_out)
                pl.BlockSpec((1, tn), lambda i, j, k, qa, ja, im, jm: (0, j)),
                # query mask: (n, 1)
                pl.BlockSpec((tm, 1), lambda i, j, k, qa, ja, im, jm: (i, 0)),
                # key mask: (1, d_out)
                pl.BlockSpec((1, tn), lambda i, j, k, qa, ja, im, jm: (0, j)),
            ],
            out_specs=pl.BlockSpec((tm, tn), lambda i, j, k, qa, ja, im, jm: (i, j)),
            scratch_shapes=[pltpu.VMEM((tm, tn), jnp.float32)],
        ),
        compiler_params=pltpu.CompilerParams(
            dimension_semantics=("parallel", "parallel", "arbitrary"),
            vmem_limit_bytes=vmem_limit),
    )(qact, jact, imap, jmap, x_bf, w_t_bf, bias2d, qmask, kmask)


# ----------------------------------------------------------------------------
# Full forward (key search in plain XLA, heavy masked matmul in Pallas)
# ----------------------------------------------------------------------------
def hk_linear_forward(x, weight_t_bf16, bias, centroids, ln_weight,
                      cluster_assign, threshold):
    """weight_t_bf16 is the (d_in, d_out) bf16 pre-transposed weight, prepared
    once outside the forward (amortized over every call)."""
    shape = x.shape
    x2 = x.reshape(-1, shape[-1])
    n, d_in = x2.shape
    d_out = weight_t_bf16.shape[1]

    # --- key search: tiny (N, n_clusters) problem, MXU-hostile -> plain XLA ---
    dots = x2 @ centroids                                              # (N, C)
    mean = dots.mean(-1, keepdims=True)
    var = ((dots - mean) ** 2).mean(-1, keepdims=True)
    normed = (dots - mean) * lax.rsqrt(var + 1e-5) * ln_weight.reshape(1, -1)
    probs = jax.nn.softmax(normed, axis=-1)
    hits = probs > threshold                                           # (N, C)
    qmask = jnp.any(hits, axis=-1, keepdims=True).astype(jnp.float32)  # (N, 1)
    cluster_hit = jnp.any(hits, axis=0)                                # (C,)
    kmask = cluster_hit[cluster_assign].astype(jnp.float32).reshape(1, d_out)

    # --- generation-aware tile selection ---
    vmem_cap = _vmem_capacity_bytes()
    big_vmem = vmem_cap >= (100 << 20)            # v5e / v6e: 128 MiB, v7x: 64 MiB
    tm_cap = 1024 if big_vmem else 512
    tk_cap = 2048 if big_vmem else 1024
    limit_cap = (96 << 20) if big_vmem else (48 << 20)

    tm = _pick_tile(n, tm_cap, 128)
    tk = _pick_tile(d_in, tk_cap, 128)
    n_i = n // tm
    tn_cap = 512
    if n_i == 1 and d_out > 128:
        # Small-N case: keep >= 2 key blocks so both v7x TensorCores get work.
        tn_cap = min(tn_cap, max(128, (d_out // 2) // 128 * 128))
    tn = _pick_tile(d_out, tn_cap, 128)
    n_j = d_out // tn

    vmem_limit = _vmem_limit_bytes(tm, tn, tk, jnp.dtype(x2.dtype).itemsize,
                                   limit_cap)

    # --- per-block activity for FLOP / DMA skipping (scalar-prefetched) ---
    qact = (qmask[:, 0].reshape(n_i, tm).max(axis=1) > 0).astype(jnp.int32)
    jact = (kmask[0].reshape(n_j, tn).max(axis=1) > 0).astype(jnp.int32)
    iidx = jnp.arange(n_i, dtype=jnp.int32)
    jidx = jnp.arange(n_j, dtype=jnp.int32)
    imap = lax.cummax(jnp.where(qact > 0, iidx, jnp.int32(0)))
    jmap = lax.cummax(jnp.where(jact > 0, jidx, jnp.int32(0)))

    # Cast activations once in XLA (halves x DMA bytes, no per-tile casts).
    x_bf = x2.astype(jnp.bfloat16)

    out = masked_linear(x_bf, weight_t_bf16, bias.reshape(1, d_out).astype(jnp.float32),
                        qmask, kmask, qact, jact, imap, jmap,
                        tm=tm, tn=tn, tk=tk, out_dtype=x2.dtype,
                        vmem_limit=vmem_limit)
    return out.reshape(*shape[:-1], d_out)


# ----------------------------------------------------------------------------
# Pure-JAX reference (same semantics, full f32) for a sanity check
# ----------------------------------------------------------------------------
def ref_forward(x, weight, bias, centroids, ln_weight, cluster_assign,
                threshold):
    shape = x.shape
    x2 = x.reshape(-1, shape[-1])
    dots = x2 @ centroids
    mean = dots.mean(-1, keepdims=True)
    var = ((dots - mean) ** 2).mean(-1, keepdims=True)
    normed = (dots - mean) * lax.rsqrt(var + 1e-5) * ln_weight.reshape(1, -1)
    probs = jax.nn.softmax(normed, axis=-1)
    hits = probs > threshold
    qmask = jnp.any(hits, axis=-1)
    chit = jnp.any(hits, axis=0)
    kmask = chit[cluster_assign]
    dense = x2 @ weight.T + bias
    out = dense * qmask[:, None].astype(dense.dtype) * kmask[None, :].astype(dense.dtype)
    return out.reshape(*shape[:-1], -1)


if __name__ == "__main__":
    # Module hyper-parameters (small, consistent with the PyTorch __init__)
    in_features = 128
    out_features = 256
    n_clusters = 8
    threshold = 0.5
    sigma = 10.0
    batch, seq = 2, 8                       # N = 16 flattened queries

    key = jax.random.PRNGKey(0)
    kw, kb, kx = jax.random.split(key, 3)

    # Deterministic parameter init (kaiming_uniform with a=sqrt(5) ==
    # uniform(-1/sqrt(fan_in), 1/sqrt(fan_in)); same bound for bias).
    bound = 1.0 / math.sqrt(in_features)
    weight = jax.random.uniform(kw, (out_features, in_features),
                                dtype=jnp.float32, minval=-bound, maxval=bound)
    bias = jax.random.uniform(kb, (out_features,), dtype=jnp.float32,
                              minval=-bound, maxval=bound)

    # Synthetic deterministic "clustering" (stand-in for the KMeans of init_hk):
    # contiguous blocks of output features; centroid = mean of its rows.
    rows_per_cluster = out_features // n_clusters
    cluster_assign = jnp.arange(out_features) // rows_per_cluster       # (Dout,)
    onehot = jax.nn.one_hot(cluster_assign, n_clusters, dtype=jnp.float32)
    centroid_rows = (onehot.T @ weight) / rows_per_cluster              # (C, Din)
    centroids = centroid_rows.T                                         # (Din, C)
    ln_weight = jnp.ones((1, n_clusters), jnp.float32) * sigma

    # One-time weight prep for the kernel: transpose + bf16 cast (amortized
    # over every forward call; halves weight HBM traffic, canonical MXU feed).
    weight_t_bf16 = jnp.asarray(weight.T, dtype=jnp.bfloat16)           # (Din, Dout)

    x = jax.random.normal(kx, (batch, seq, in_features), dtype=jnp.float32)

    out = hk_linear_forward(x, weight_t_bf16, bias, centroids, ln_weight,
                            cluster_assign, threshold)
    out = jax.block_until_ready(out)

    ref = ref_forward(x, weight, bias, centroids, ln_weight, cluster_assign,
                      threshold)
    assert out.shape == (batch, seq, out_features)
    # bf16 MXU operands with f32 accumulation: documented precision contract.
    assert jnp.allclose(out, ref, atol=2e-2, rtol=2e-2), "mismatch vs reference"

    print("KERNEL_OK")
</pallas_src>

<mosaic_0001>
module attributes {stable_mosaic.version = 11 : i64} {
  func.func @_masked_linear_kernel(%arg0: i32, %arg1: i32, %arg2: i32, %arg3: memref<1xi32, #tpu.memory_space<smem>>, %arg4: memref<2xi32, #tpu.memory_space<smem>>, %arg5: memref<1xi32, #tpu.memory_space<smem>>, %arg6: memref<2xi32, #tpu.memory_space<smem>>, %arg7: memref<16x128xbf16, #tpu.memory_space<vmem>>, %arg8: memref<128x128xbf16, #tpu.memory_space<vmem>>, %arg9: memref<1x128xf32, #tpu.memory_space<vmem>>, %arg10: memref<16x1xf32, #tpu.memory_space<vmem>>, %arg11: memref<1x128xf32, #tpu.memory_space<vmem>>, %arg12: memref<16x128xf32, #tpu.memory_space<vmem>>, %arg13: memref<16x128xf32, #tpu.memory_space<vmem>>) attributes {dimension_semantics = [#tpu.dimension_semantics<parallel>, #tpu.dimension_semantics<parallel>, #tpu.dimension_semantics<arbitrary>], iteration_bounds = array<i64: 1, 2, 1>, scalar_prefetch = 4 : i64, scratch_operands = 1 : i64, tpu.core_type = #tpu.core_type<tc>, window_params = [{transform_indices = @transform_0, window_bounds = array<i64: 16, 128>}, {transform_indices = @transform_1, window_bounds = array<i64: 128, 128>}, {transform_indices = @transform_2, window_bounds = array<i64: 1, 128>}, {transform_indices = @transform_3, window_bounds = array<i64: 16, 1>}, {transform_indices = @transform_4, window_bounds = array<i64: 1, 128>}, {transform_indices = @transform_5, window_bounds = array<i64: 16, 128>}]} {
    %0 = arith.index_cast %arg0 : i32 to index
    %1 = memref.load %arg3[%0] : memref<1xi32, #tpu.memory_space<smem>>
    %c0_i32 = arith.constant 0 : i32
    %2 = arith.cmpi sgt, %1, %c0_i32 : i32
    %3 = arith.index_cast %arg1 : i32 to index
    %4 = memref.load %arg4[%3] : memref<2xi32, #tpu.memory_space<smem>>
    %c0_i32_0 = arith.constant 0 : i32
    %5 = arith.cmpi sgt, %4, %c0_i32_0 : i32
    %6 = arith.andi %2, %5 : i1
    %c0_i32_1 = arith.constant 0 : i32
    %7 = arith.cmpi eq, %arg2, %c0_i32_1 : i32
    %true = arith.constant true
    %8 = arith.xori %6, %true : i1
    %9 = arith.andi %7, %8 : i1
    %10 = arith.extui %9 : i1 to i32
    %c0_i32_2 = arith.constant 0 : i32
    %11 = arith.cmpi ne, %10, %c0_i32_2 : i32
    scf.if %11 {
      %cst = arith.constant 0.000000e+00 : f32
      %22 = vector.broadcast %cst : f32 to vector<16x128xf32>
      %c0 = arith.constant 0 : index
      %c0_8 = arith.constant 0 : index
      %23 = vector.load %arg12[%c0, %c0_8] : memref<16x128xf32, #tpu.memory_space<vmem>>, vector<16x128xf32>
      tpu.vector_store %arg12[%c0, %c0_8], %22 {strides = array<i32>} : memref<16x128xf32, #tpu.memory_space<vmem>>, vector<16x128xf32>,
    } else {
    }
    %c0_i32_3 = arith.constant 0 : i32
    %12 = arith.cmpi eq, %arg2, %c0_i32_3 : i32
    %13 = arith.andi %12, %6 : i1
    %14 = arith.extui %13 : i1 to i32
    %c0_i32_4 = arith.constant 0 : i32
    %15 = arith.cmpi ne, %14, %c0_i32_4 : i32
    scf.if %15 {
      %cst = arith.constant 0.000000e+00 : f32
      %22 = vector.broadcast %cst : f32 to vector<16x128xf32>
      %c0 = arith.constant 0 : index
      %c0_8 = arith.constant 0 : index
      %23 = vector.load %arg13[%c0, %c0_8] : memref<16x128xf32, #tpu.memory_space<vmem>>, vector<16x128xf32>
      tpu.vector_store %arg13[%c0, %c0_8], %22 {strides = array<i32>} : memref<16x128xf32, #tpu.memory_space<vmem>>, vector<16x128xf32>,
    } else {
    }
    %16 = arith.extui %6 : i1 to i32
    %c0_i32_5 = arith.constant 0 : i32
    %17 = arith.cmpi ne, %16, %c0_i32_5 : i32
    scf.if %17 {
      %c0 = arith.constant 0 : index
      %c0_8 = arith.constant 0 : index
      %22 = vector.load %arg13[%c0, %c0_8] : memref<16x128xf32, #tpu.memory_space<vmem>>, vector<16x128xf32>
      %c0_9 = arith.constant 0 : index
      %c0_10 = arith.constant 0 : index
      %23 = vector.load %arg7[%c0_9, %c0_10] : memref<16x128xbf16, #tpu.memory_space<vmem>>, vector<16x128xbf16>
      %c0_11 = arith.constant 0 : index
      %c0_12 = arith.constant 0 : index
      %24 = vector.load %arg8[%c0_11, %c0_12] : memref<128x128xbf16, #tpu.memory_space<vmem>>, vector<128x128xbf16>
      %cst = arith.constant dense<0.000000e+00> : vector<16x128xf32>
      %25 = tpu.matmul %23, %24, %cst {dimension_numbers = #tpu.dot_dimension_numbers<[1], [0], [0], [1], [0, 0, 1, 1], [], []>} : vector<16x128xbf16>, vector<128x128xbf16>, vector<16x128xf32> -> vector<16x128xf32>
      %26 = arith.addf %22, %25 : vector<16x128xf32>
      %c0_13 = arith.constant 0 : index
      %c0_14 = arith.constant 0 : index
      %27 = vector.load %arg13[%c0_13, %c0_14] : memref<16x128xf32, #tpu.memory_space<vmem>>, vector<16x128xf32>
      tpu.vector_store %arg13[%c0_13, %c0_14], %26 {strides = array<i32>} : memref<16x128xf32, #tpu.memory_space<vmem>>, vector<16x128xf32>,
    } else {
    }
    %c0_i32_6 = arith.constant 0 : i32
    %18 = arith.cmpi eq, %arg2, %c0_i32_6 : i32
    %19 = arith.andi %18, %6 : i1
    %20 = arith.extui %19 : i1 to i32
    %c0_i32_7 = arith.constant 0 : i32
    %21 = arith.cmpi ne, %20, %c0_i32_7 : i32
    scf.if %21 {
      %c0 = arith.constant 0 : index
      %c0_8 = arith.constant 0 : index
      %22 = vector.load %arg13[%c0, %c0_8] : memref<16x128xf32, #tpu.memory_space<vmem>>, vector<16x128xf32>
      %c0_9 = arith.constant 0 : index
      %c0_10 = arith.constant 0 : index
      %23 = vector.load %arg9[%c0_9, %c0_10] : memref<1x128xf32, #tpu.memory_space<vmem>>, vector<1x128xf32>
      %24 = vector.broadcast %23 : vector<1x128xf32> to vector<16x128xf32>
      %25 = arith.addf %22, %24 : vector<16x128xf32>
      %c0_11 = arith.constant 0 : index
      %c0_12 = arith.constant 0 : index
      %26 = vector.load %arg10[%c0_11, %c0_12] : memref<16x1xf32, #tpu.memory_space<vmem>>, vector<16x1xf32>
      %27 = vector.broadcast %26 : vector<16x1xf32> to vector<16x128xf32>
      %28 = arith.mulf %25, %27 : vector<16x128xf32>
      %c0_13 = arith.constant 0 : index
      %c0_14 = arith.constant 0 : index
      %29 = vector.load %arg11[%c0_13, %c0_14] : memref<1x128xf32, #tpu.memory_space<vmem>>, vector<1x128xf32>
      %30 = vector.broadcast %29 : vector<1x128xf32> to vector<16x128xf32>
      %31 = arith.mulf %28, %30 : vector<16x128xf32>
      %c0_15 = arith.constant 0 : index
      %c0_16 = arith.constant 0 : index
      %32 = vector.load %arg12[%c0_15, %c0_16] : memref<16x128xf32, #tpu.memory_space<vmem>>, vector<16x128xf32>
      tpu.vector_store %arg12[%c0_15, %c0_16], %31 {strides = array<i32>} : memref<16x128xf32, #tpu.memory_space<vmem>>, vector<16x128xf32>,
    } else {
    }
    return
  }
  func.func @transform_0(%arg0: i32, %arg1: i32, %arg2: i32, %arg3: memref<1xi32, #tpu.memory_space<smem>>, %arg4: memref<2xi32, #tpu.memory_space<smem>>, %arg5: memref<1xi32, #tpu.memory_space<smem>>, %arg6: memref<2xi32, #tpu.memory_space<smem>>) -> (i32, i32) {
    %0 = arith.index_cast %arg0 : i32 to index
    %1 = memref.load %arg5[%0] : memref<1xi32, #tpu.memory_space<smem>>
    %c0_i32 = arith.constant 0 : i32
    return %1, %arg2 : i32, i32
  }
  func.func @transform_1(%arg0: i32, %arg1: i32, %arg2: i32, %arg3: memref<1xi32, #tpu.memory_space<smem>>, %arg4: memref<2xi32, #tpu.memory_space<smem>>, %arg5: memref<1xi32, #tpu.memory_space<smem>>, %arg6: memref<2xi32, #tpu.memory_space<smem>>) -> (i32, i32) {
    %0 = arith.index_cast %arg1 : i32 to index
    %1 = memref.load %arg6[%0] : memref<2xi32, #tpu.memory_space<smem>>
    %c0_i32 = arith.constant 0 : i32
    return %arg2, %1 : i32, i32
  }
  func.func @transform_2(%arg0: i32, %arg1: i32, %arg2: i32, %arg3: memref<1xi32, #tpu.memory_space<smem>>, %arg4: memref<2xi32, #tpu.memory_space<smem>>, %arg5: memref<1xi32, #tpu.memory_space<smem>>, %arg6: memref<2xi32, #tpu.memory_space<smem>>) -> (i32, i32) {
    %c0_i32 = arith.constant 0 : i32
    %c0_i32_0 = arith.constant 0 : i32
    return %c0_i32, %arg1 : i32, i32
  }
  func.func @transform_3(%arg0: i32, %arg1: i32, %arg2: i32, %arg3: memref<1xi32, #tpu.memory_space<smem>>, %arg4: memref<2xi32, #tpu.memory_space<smem>>, %arg5: memref<1xi32, #tpu.memory_space<smem>>, %arg6: memref<2xi32, #tpu.memory_space<smem>>) -> (i32, i32) {
    %c0_i32 = arith.constant 0 : i32
    %c0_i32_0 = arith.constant 0 : i32
    return %arg0, %c0_i32 : i32, i32
  }
  func.func @transform_4(%arg0: i32, %arg1: i32, %arg2: i32, %arg3: memref<1xi32, #tpu.memory_space<smem>>, %arg4: memref<2xi32, #tpu.memory_space<smem>>, %arg5: memref<1xi32, #tpu.memory_space<smem>>, %arg6: memref<2xi32, #tpu.memory_space<smem>>) -> (i32, i32) {
    %c0_i32 = arith.constant 0 : i32
    %c0_i32_0 = arith.constant 0 : i32
    return %c0_i32, %arg1 : i32, i32
  }
  func.func @transform_5(%arg0: i32, %arg1: i32, %arg2: i32, %arg3: memref<1xi32, #tpu.memory_space<smem>>, %arg4: memref<2xi32, #tpu.memory_space<smem>>, %arg5: memref<1xi32, #tpu.memory_space<smem>>, %arg6: memref<2xi32, #tpu.memory_space<smem>>) -> (i32, i32) {
    %c0_i32 = arith.constant 0 : i32
    return %arg0, %arg1 : i32, i32
  }
}

</mosaic_0001>

<bundles_post_ra>
// kernel: tpu_custom_call.1
= control target key start
LH: loop header
LB: loop body
LE: loop exit
PB: predicated region body
PF: predicated region fallthrough
CT: control target
= control target key end

     0   :  { %s1394_s0 = inlined_call_operand.<no memory space> [shape: s32[1], index: 0, kind: input, shape index: {}]   ;;  %s1395_s1 = inlined_call_operand.vmem [shape: s32[2], index: 1, kind: input, shape index: {}]   ;;  %s1396_s2 = inlined_call_operand.<no memory space> [shape: s32[1], index: 2, kind: input, shape index: {}]   ;;  %s1397_s4 = inlined_call_operand.vmem [shape: bf16[16,128], index: 4, kind: input, shape index: {}]   ;;  %s1398_s5 = inlined_call_operand.hbm [shape: bf16[128,256], index: 5, kind: input, shape index: {}]   ;;  %s1399_s6 = inlined_call_operand.vmem [shape: f32[1,256], index: 6, kind: input, shape index: {}]   ;;  %s1400_s7 = inlined_call_operand.vmem [shape: f32[16,1], index: 7, kind: input, shape index: {}]   ;;  %s1401_s8 = inlined_call_operand.vmem [shape: f32[1,256], index: 8, kind: input, shape index: {}]   ;;  %s1402_s9 = inlined_call_operand.hbm [shape: f32[16,256], index: 9, kind: output, shape index: {}]   ;;  %s1403_s3 = inlined_call_operand.vmem [shape: s32[2], index: 3, kind: input, shape index: {}]  }
   0x1   :  { %1410 = sst [smem:[#allocation21_spill]] %s1398_s5  ;;  %s15_s13 = sshll.u32 %s1395_s1, 4  ;;  %s16_s13 = int_to_ptr.vmem [resolvable:$true] %s15_s13 }
   0x2   :  { %14 = sst [smem:[#allocation4]] %s1394_s0  ;;  %s886_s16 = scalar_lea.vmem %s16_s13, 16 }
   0x3   :  { %19 = sst [smem:[#allocation6]] %s1396_s2  ;;  %p887_p0 = scmp.ne.s32.totalorder %s16_s13, %s886_s16 }
   0x4   :  { %p891_p1 = scmp.lt.s32.totalorder %s16_s13, %s16_s13  ;;  %p892_p2 = scmp.lt.s32.totalorder %s886_s16, %s886_s16 }
   0x6   :  { %p893_p3 = por %p892_p2, %p891_p1 }
   0x8   :  { %p894_p4 = pnand %p893_p3, %p887_p0 }
   0xa   :  { %897 = shalt.err (!%p894_p4)  }
   0xb   :  { %s1046_s17 = smov [#allocation5]   ;;  %s20_s19 = sshll.u32 %s1403_s3, 4  ;;  %s21_s19 = int_to_ptr.vmem [resolvable:$true] %s20_s19 }
   0xc   :  { %18 = dma.vmem_to_smem %s16_s13, 16, %s1046_s17, [#allocation3] }
   0xd   :  { %s898_s1 = scalar_lea.vmem %s21_s19, 16  ;;  %p903_p6 = scmp.lt.s32.totalorder %s21_s19, %s21_s19 }
   0xe   :  { %p899_p5 = scmp.ne.s32.totalorder %s21_s19, %s898_s1  ;;  %p904_p7 = scmp.lt.s32.totalorder %s898_s1, %s898_s1 }
  0x10   :  { %p905_p8 = por %p904_p7, %p903_p6 }
  0x12   :  { %p906_p9 = pnand %p905_p8, %p899_p5 }
  0x14   :  { %909 = shalt.err (!%p906_p9)  }
  0x15   :  { %s1047_s2 = smov [#allocation7]  }
  0x16   :  { %23 = dma.vmem_to_smem %s21_s19, 16, %s1047_s2, [#allocation3] }
  0x17   :  { %1000 = dma.done.wait [#allocation3], 32 }
  0x18   :  { %1001 = vsyncadd [#allocation3], 4294967264 }
  0x19   :  { %25 = sfence }
  0x1a   :  { %26 = vsyncpa [#allocation9], 0 }
  0x1b   :  { %28 = vsyncpa [#allocation9 + $0x1], 0 }
  0x1c   :  { %29 = vsyncpa [#allocation10], 0 }
  0x1d   :  { %31 = vsyncpa [#allocation10 + $0x1], 0  ;;  %s1123_s20 = smov 0   ;;  %s1125_s3 = smov 0  }
  0x1e   :  { %s1127_s21 = smov 0   ;;  %s1129_s22 = smov 0  }
  0x1f   :  { %s1131_s23 = smov 0   ;;  %s1133_s24 = smov 0  }
  0x20   :  { %s1135_s25 = smov 0   ;;  %s1137_s26 = smov 0  }
  0x21   :  { %s1139_s27 = smov 0  }
  0x22 LB: > { %1411 = sst [smem:[#allocation17_spill]] %s1032_s24  ;;  %s715_s28 = sadd.s32 4294967295, %s1044_s27   ;;  %s1044_s27 = sphi %s1139_s27, %s37_s27   ;;  %s1040_s26 = sphi %s1137_s26, %s1432_s26   ;;  %s1036_s25 = sphi %s1135_s25, %s1431_s25   ;;  %s1032_s24 = sphi %s1133_s24, %s1430_s24   ;;  %s1028_s23 = sphi %s1131_s23, %s1437_s23   ;;  %s1024_s22 = sphi %s1129_s22, %s1436_s22   ;;  %s1020_s21 = sphi %s1127_s21, %s1435_s21   ;;  %s1016_s3 = sphi %s1125_s3, %s1434_s3   ;;  %s1012_s20 = sphi %s1123_s20, %s1433_s20  }
  0x23   : > { %1412 = sst [smem:[#allocation18_spill]] %s1040_s26  ;;  %s716_s29 = sadd.s32 4294967294, %s1044_s27  }
  0x24   : > { %s52_s30 = sadd.s32 1, %s1040_s26  ;;  %s90_s10 = sld [smem:[#allocation7 + %s1040_s26]] }
  0x25   : > { %p54_p10 = scmp.ge.s32.totalorder %s52_s30, 2  ;;  %s97_s11 = sadd.s32 1, %s1032_s24 }
  0x26   : > { %p104_p11 = scmp.ne.s32.totalorder %s1032_s24, %s1028_s23  ;;  %p105_p12 = scmp.eq.s32.totalorder %s1044_s27, 0 }
  0x27   : > { %s1439_s30 = smov (%p54_p10, %s52_s30), 0  ;;  %p110_p0 = scmp.ne.s32.totalorder %s1028_s23, %s1024_s22 }
  0x28   : > { %1413 = sst [smem:[#allocation19_spill]] %s1439_s30  ;;  %p1176_p13 = por %p105_p12, %p104_p11 }
  0x29   : > { %s91_s13 = sld [smem:[#allocation7 + %s1439_s30]]  ;;  %p111_p1 = scmp.eq.s32.totalorder %s715_s28, 0 }
  0x2a   : > { %s199_s14 = ssub.s32 %s1040_s26, %s1439_s30  ;;  %s203_s15 = sadd.s32 1, %s1020_s21 }
  0x2b   : > { %p1185_p2 = por %p111_p1, %p110_p0  ;;  %p201_p3 = scmp.eq.s32.totalorder %s199_s14, 0 }
  0x2c   : > { %p213_p4 = scmp.ne.s32.totalorder %s1020_s21, %s1016_s3  ;;  %p214_p5 = scmp.eq.s32.totalorder %s715_s28, 1 }
  0x2d   : > { %s1415_s16 = scalar_select %p1185_p2, 1, 0 }
  0x2e   : > { %s1192_s17 = scalar_select %p201_p3, %s1020_s21, %s203_s15  }
  0x2f   : > { %p1194_p6 = por %p214_p5, %p213_p4  ;;  %p219_p7 = scmp.ne.s32.totalorder %s1016_s3, %s1012_s20 }
  0x30   : > { %s93_s0 = ssub.s32 %s90_s10, %s91_s13  ;;  %p220_p8 = scmp.eq.s32.totalorder %s716_s29, 1 }
  0x31   : > { %s1416_s18 = scalar_select %p1194_p6, 1, 0 }
  0x32   : > { %p95_p9 = scmp.eq.s32.totalorder %s93_s0, 0  ;;  %p1201_p11 = por %p220_p8, %p219_p7 }
  0x33   : > { %p789_p12 = scmp.lt.s32.totalorder %s1044_s27, 2  ;;  %s263_s2 = sand.u32 1, %s1032_s24  }
  0x34   : > { %s1417_s19 = scalar_select %p1201_p11, 1, 0 }
  0x35   : > { %s1207_s1 = scalar_select %p95_p9, %s1032_s24, %s97_s11  }
  0x36   : > { %p1212_p0 = pnand %p789_p12, %p1176_p13  ;;  %s720_s28 = sshll.u32 %s263_s2, 6 }
  0x37   : > { %1418 = sst [smem:[#allocation20_spill]] %s1207_s1  ;;  %s267_s14 = scalar_lea.vmem [#allocation8], %s720_s28 }
  0x38   : > { %s773_s29 = scalar_select %p1176_p13, [#allocation7], [#allocation12] }
  0x39   : > { %s774_s10 = scalar_select %p1176_p13, %s1040_s26, 0 }
  0x3a   : > { %s1441_s29 = smov (!%p789_p12, %s773_s29), [#allocation13]  ;;  %s277_s15 = sshll.u32 %s267_s14, 4  ;;  %s1223_s15 = int_to_ptr.vmem [resolvable:$true] %s277_s15 }
  0x3b   : > { %s1443_s10 = smov (!%p789_p12, %s774_s10), 0  ;;  %p722_p1 = scmp.ge.s32.totalorder %s1044_s27, 1 }
  0x3c   : > { %s268_s13 = sld [smem:[%s1441_s29 + %s1443_s10]]  ;;  %p297_p3 = scmp.lt.s32.totalorder %s1044_s27, 3 }
  0x3d   : > { %s1421_s5 = sld [smem:[#allocation21_spill]]  ;;  %s1234_s29 = scalar_lea.sflag [#allocation9], %s263_s2 }
  0x3e   : > { %p1225_p4 = pnand %p722_p1, %p297_p3  ;;  %p912_p5 = pneg %p1212_p0 }
  0x40   : > { %s1420_s11 = scalar_select %p1225_p4, 1, 0 }
  0x42   : > { %s721_s0 = sshll.u32 %s268_s13, 6 }
  0x43   : > { %s1232_s12 = scalar_lea.hbm %s1421_s5, %s721_s0  ;;  %s915_s13 = scalar_lea.hbm %s1421_s5, 2048 }
  0x44   : > { %s910_s28 = scalar_lea.hbm %s1232_s12, 1024  ;;  %p916_p9 = scmp.lt.s32.totalorder %s1232_s12, %s1421_s5 }
  0x45   : > { %p911_p13 = scmp.ne.s32.totalorder %s1232_s12, %s910_s28  ;;  %p917_p12 = scmp.lt.s32.totalorder %s915_s13, %s910_s28 }
  0x47   : > { %p913_p7 = pnand %p912_p5, %p911_p13  ;;  %p918_p1 = por %p917_p12, %p916_p9 }
  0x49   : > { %p914_p8 = pneg %p913_p7 }
  0x4b   : > { %p919_p3 = pnand %p918_p1, %p914_p8 }
  0x4d   : > { %922 = shalt.err (!%p919_p3)
}
  0x4e   : > { %s923_s30 = scalar_lea.vmem %s1223_s15, 1024  ;;  %s1048_s1 = smov [#allocation8]  }
  0x4f   : > { %p924_p10 = scmp.ne.s32.totalorder %s1223_s15, %s923_s30  ;;  %s928_s2 = sshll.u32 %s1048_s1, 4  ;;  %s929_s2 = int_to_ptr.vmem [resolvable:$false] %s928_s2 }
  0x50   : > { %s930_s0 = scalar_lea.vmem %s929_s2, 2048  ;;  %p931_p7 = scmp.lt.s32.totalorder %s1223_s15, %s929_s2 }
  0x51   : > { %p926_p11 = pnand %p924_p10, %p912_p5  ;;  %p932_p6 = scmp.lt.s32.totalorder %s930_s0, %s923_s30 }
  0x53   : > { %p927_p13 = pneg %p926_p11  ;;  %p933_p2 = por %p932_p6, %p931_p7 }
  0x55   : > { %p934_p4 = pnand %p933_p2, %p927_p13 }
  0x57   : > { %937 = shalt.err (!%p934_p4)
}
  0x58   : > { %s1049_s24 = smov 128   ;;  %s1050_s26 = smov 64  }
  0x59   : > { %s1051_s28 = smov 4   ;;  %p1422_p10 = scmp.ne.s32.totalorder %s1420_s11, 0 }
  0x5a   : > { %784 = dma.hbm_to_vmem [thread:$0]  (!%p1212_p0), %s1232_s12, 1024, %s1223_s15, %s1234_s29, %s1049_s24, %s1050_s26, %s1051_s28  }
  0x5b   : > { %301 = sbr.rel (%p1422_p10) target bundleno = 527 (0x20f), region = 40  ;;  %s303_s10 = sand.u32 (!%p1422_p10), 1, %s1028_s23  }
  0x5c   : > { %s723_s14 = sshll.u32 (!%p1422_p10), %s303_s10, 6  ;;  %s304_s13 = scalar_lea.sflag (!%p1422_p10), [#allocation9], %s303_s10 }
  0x5d   : > { %s1258_s30 = scalar_lea.vmem (!%p1422_p10), [#allocation8], %s723_s14  ;;  %p1423_p2 = scmp.ne.s32.totalorder (!%p1422_p10), %s1415_s16, 0 }
  0x60   : > { %1003 = dma.done.wait (%p1423_p2), %s304_s13, 1024  }
  0x61   : > { %1005 = vsyncadd (%p1423_p2), %s304_s13, 4294966272  ;;  %s1409_s22 = sand.u32 1, %s1016_s3   ;;  %p367_p6 = scmp.lt.s32.totalorder %s1036_s25, 1 }
  0x62   : > { %s354_s15 = sld [smem:[#allocation6]]  ;;  %s724_s11 = sshll.u32 %s1409_s22, 4 }
  0x63   : > { %s381_s12 = sld [smem:[#allocation4]]  ;;  %s1289_s0 = scalar_lea.vmem [#allocation11], %s724_s11 }
  0x64   : > { %s383_s29 = sld [smem:[#allocation5 + %s1036_s25]] }
  0x65   : > { %s1270_s1 = scalar_select %p367_p6, %s1036_s25, 1 }
  0x67   : > { %s369_s16 = scalar_lea.vmem %s1399_s6, %s1270_s1  ;;  %s378_s28 = scalar_lea.vmem %s1401_s8, %s1270_s1 }
  0x68   : > { %s725_s10 = sshll.u32 %s354_s15, 1 }
  0x69   : > { %p356_p11 = scmp.lt.s32.totalorder %s725_s10, 1  ;;  %p382_p0 = scmp.gt.s32.totalorder %s381_s12, 0 }
  0x6a   : > { %p384_p4 = scmp.gt.s32.totalorder %s383_s29, 0 }
  0x6b   : > { %s1445_s10 = smov (!%p356_p11, %s725_s10), 1 }
  0x6c   : > { %p1280_p5 = pnand %p384_p4, %p382_p0  ;;  %s726_s13 = sshll.u32 %s1445_s10, 2 }
  0x6d   : > { %s1287_s2 = scalar_lea.vmem %s1397_s4, %s726_s13  ;;  %v1052_v0 = vmov (%p1280_p5), 0.0  }
  0x6e   : > { %392 = sbr.rel (!%p1280_p5) target bundleno = 115 (0x73), region = 48  ;;  %393 = vst [vmem:[%s1289_s0] sm:$0xff] (%p1280_p5), %v1052_v0  ;;  %394 = vst [vmem:[%s1289_s0 + $0x8] sm:$0xff] (%p1280_p5), %v1052_v0 }
  0x73 PF: > { %398 = sbr.rel (%p1280_p5) target bundleno = 122 (0x7a), region = 52 }
  0x78   : > { %v1053_v1 = vmov 0.0  }
  0x79   : > { %399 = vst [vmem:[#allocation2] sm:$0xff] %v1053_v1  ;;  %400 = vst [vmem:[#allocation2 + $0x8] sm:$0xff] %v1053_v1 }
  0x7a PF: > { %402 = sbr.rel (%p1280_p5) target bundleno = 360 (0x168), region = 56 }
  0x7f   : > { %v876_v2 = vld [vmem:[%s1258_s30 + $0x38] sm:$0xff]   ;;  %v1054_v3 = vmov 0.0   ;;  %v877_v4 = vld [vmem:[%s1258_s30 + $0x30] sm:$0xff]   ;;  %vm1055_vm0 = vmmov 0   ;;  %v878_v5 = vld [vmem:[%s1258_s30 + $0x28] sm:$0xff]  }
  0x80   : > { %753 = vmatprep.subr.bf16.mxu0 %v1054_v3  ;;  %769 = vmatprep.mubr.msk.bf16.mxu0 %vm1055_vm0, %v1054_v3  ;;  %v879_v6 = vld [vmem:[%s1258_s30 + $0x20] sm:$0xff]   ;;  %v880_v7 = vld [vmem:[%s1258_s30 + $0x18] sm:$0xff]   ;;  %v881_v8 = vld [vmem:[%s1258_s30 + $0x10] sm:$0xff]  }
  0x81   : > { %754 = vmatpush3.bf16.msra.mxu0 %v876_v2  ;;  %v882_v9 = vld [vmem:[%s1258_s30 + $0x8] sm:$0xff]   ;;  %v883_v10 = vld [vmem:[%s1258_s30] sm:$0xff]   ;;  %v884_v11 = vld [vmem:[%s1287_s2] sm:$0xff]  }
  0x82   : > { %755 = vmatprep.subr.bf16.mxu0 %v1054_v3  ;;  %v403_v12 = vld [vmem:[#allocation2] sm:$0xff]  ;;  %v404_v16 = vld [vmem:[#allocation2 + $0x8] sm:$0xff] }
  0x85   : > { %756 = vmatpush3.bf16.msra.mxu0 %v877_v4 }
  0x86   : > { %757 = vmatprep.subr.bf16.mxu0 %v1054_v3 }
  0x89   : > { %758 = vmatpush3.bf16.msra.mxu0 %v878_v5 }
  0x8a   : > { %759 = vmatprep.subr.bf16.mxu0 %v1054_v3 }
  0x8d   : > { %760 = vmatpush3.bf16.msra.mxu0 %v879_v6 }
  0x8e   : > { %761 = vmatprep.subr.bf16.mxu0 %v1054_v3 }
  0x91   : > { %762 = vmatpush3.bf16.msra.mxu0 %v880_v7 }
  0x92   : > { %763 = vmatprep.subr.bf16.mxu0 %v1054_v3 }
  0x95   : > { %764 = vmatpush3.bf16.msra.mxu0 %v881_v8 }
  0x96   : > { %765 = vmatprep.subr.bf16.mxu0 %v1054_v3 }
  0x99   : > { %766 = vmatpush3.bf16.msra.mxu0 %v882_v9 }
  0x9a   : > { %767 = vmatprep.subr.bf16.mxu0 %v1054_v3 }
  0x9d   : > { %768 = vmatpush3.bf16.msra.mxu0 %v883_v10 }
  0xa0   : > { %770 = vmatmul.mubr.bf16.vlgmr.msra.gmra.mxu0 %v884_v11 }
 0x160   : > { %v511_v13 = vpop.f32.mrf.mxu0 }
 0x161   : > { %v518_v14 = vadd.f32 %v511_v13, %v403_v12 }
 0x162   : > { %v771_v15 = vpop.f32.mrf.mxu0 }
 0x163   : > { %520 = vst [vmem:[#allocation2] sm:$0xff] %v518_v14 }
 0x164   : > { %v514_v17 = vpop.f32.mrf.mxu0 }
 0x165   : > { %v519_v18 = vadd.f32 %v514_v17, %v404_v16 }
 0x166   : > { %v772_v19 = vpop.f32.mrf.mxu0 }
 0x167   : > { %521 = vst [vmem:[#allocation2 + $0x8] sm:$0xff] %v519_v18 }
 0x168 PF: > { %523 = sbr.rel (%p1280_p5) target bundleno = 500 (0x1f4), region = 60 }
 0x16d   : > { %v535_v20 = vld [vmem:[%s1400_s7] sm:$0xff]  ;;  %v1056_v21 = vmov 0   ;;  %v536_v22 = vld [vmem:[%s1400_s7 + $0x8] sm:$0xff] }
 0x16e   : > { %885 = vset.pattern.permute.xlu0 %v1056_v21  ;;  %v524_v23 = vld [vmem:[#allocation2] sm:$0xff]  ;;  %v525_v26 = vld [vmem:[#allocation2 + $0x8] sm:$0xff] }
 0x16f   : > { %539 = vperm.xlu0 %885, %v535_v20   ;;  %v738_v24 = vld [vmem:[%s369_s16] ss:$0 sm:$0xff] }
 0x170   : > { %v533_v25 = vadd.f32 %v738_v24, %v524_v23  ;;  %v739_v27 = vld [vmem:[%s378_s28] ss:$0 sm:$0xff]  ;;  %v534_v30 = vadd.f32 %v738_v24, %v525_v26 }
 0x173   : > { %544 = vperm.xlu0 %885, %v536_v22  }
 0x1ea   : > { %v540_v28 = vpop.permute.xlu0 %539 }
 0x1eb   : > { %v547_v29 = vmul.f32 %v540_v28, %v533_v25 }
 0x1ed   : > { %v556_v31 = vmul.f32 %v739_v27, %v547_v29 }
 0x1ee   : > { %v545_v32 = vpop.permute.xlu0 %544 }
 0x1ef   : > { %558 = vst [vmem:[%s1289_s0] sm:$0xff] %v556_v31  ;;  %v548_v33 = vmul.f32 %v545_v32, %v534_v30 }
 0x1f1   : > { %v557_v34 = vmul.f32 %v739_v27, %v548_v33 }
 0x1f3   : > { %559 = vst [vmem:[%s1289_s0 + $0x8] sm:$0xff] %v557_v34 }
 0x1f4 PF: > { %s741_s16 = sshll.u32 %s1036_s25, 7  ;;  %s576_s28 = sshll.u32 %s1289_s0, 4  ;;  %s1335_s28 = int_to_ptr.vmem [resolvable:$true] %s576_s28 }
 0x1f5   : > { %s1332_s1 = scalar_lea.hbm %s1402_s9, %s741_s16  ;;  %s1425_s14 = sand.u32 1, %s1016_s3  }
 0x1f6   : > { %s1339_s13 = scalar_lea.sflag [#allocation10], %s1425_s14  ;;  %s938_s2 = scalar_lea.vmem %s1335_s28, 256 }
 0x1f7   : > { %p939_p8 = scmp.ne.s32.totalorder %s1335_s28, %s938_s2  ;;  %p1426_p9 = scmp.ne.s32.totalorder %s1416_s18, 0 }
 0x1f8   : > { %s1057_s25 = smov [#allocation11]  }
 0x1f9   : > { %p940_p12 = pnand %p939_p8, %p1426_p9  ;;  %s942_s5 = sshll.u32 %s1057_s25, 4  ;;  %s943_s5 = int_to_ptr.vmem [resolvable:$false] %s942_s5 }
 0x1fa   : > { %s944_s30 = scalar_lea.vmem %s943_s5, 512  ;;  %p945_p3 = scmp.lt.s32.totalorder %s1335_s28, %s943_s5 }
 0x1fb   : > { %p941_p1 = pneg %p940_p12  ;;  %p946_p13 = scmp.lt.s32.totalorder %s944_s30, %s938_s2 }
 0x1fd   : > { %p947_p7 = por %p946_p13, %p945_p3 }
 0x1ff   : > { %p948_p10 = pnand %p947_p7, %p941_p1 }
 0x201   : > { %951 = shalt.err (!%p948_p10)
}
 0x202   : > { %s952_s0 = scalar_lea.hbm %s1332_s1, 256  ;;  %s956_s11 = scalar_lea.hbm %s1402_s9, 512 }
 0x203   : > { %p953_p2 = scmp.ne.s32.totalorder %s1332_s1, %s952_s0  ;;  %p957_p0 = scmp.lt.s32.totalorder %s1332_s1, %s1402_s9 }
 0x204   : > { %p958_p4 = scmp.lt.s32.totalorder %s956_s11, %s952_s0 }
 0x205   : > { %p954_p6 = pnand %p953_p2, %p1426_p9 }
 0x206   : > { %p959_p5 = por %p958_p4, %p957_p0 }
 0x207   : > { %p955_p11 = pneg %p954_p6 }
 0x209   : > { %p960_p8 = pnand %p959_p5, %p955_p11 }
 0x20b   : > { %963 = shalt.err (!%p960_p8)
}
 0x20c   : > { %s1058_s24 = smov 128   ;;  %s1059_s16 = smov 256  }
 0x20d   : > { %s1060_s26 = smov 8  }
 0x20e   : > { %777 = dma.vmem_to_hbm [thread:$0]  (%p1426_p9), %s1335_s28, 256, %s1332_s1, %s1339_s13, %s1058_s24, %s1059_s16, %s1060_s26  }
 0x20f PF: > { %s591_s10 = sand.u32 1, %s1012_s20   ;;  %p1427_p12 = scmp.ne.s32.totalorder %s1417_s19, 0 }
 0x210   : > { %p1428_p1 = scmp.ge.s32.totalorder %s1044_s27, 2  ;;  %s592_s14 = scalar_lea.sflag [#allocation10], %s591_s10 }
 0x212   : > { %p786_p3 = pnand %p1428_p1, %p1427_p12 }
 0x214   : > { %p787_p13 = pneg %p786_p3 }
 0x216   : > { %1007 = dma.done.wait (%p787_p13), %s592_s14, 256  }
 0x217   : > { %1009 = vsyncadd (%p787_p13), %s592_s14, 4294967040  ;;  %s37_s27 = sadd.s32 1, %s1044_s27   ;;  %s1429_s18 = sld [smem:[#allocation17_spill]] }
 0x218   : > { %p34_p7 = scmp.ge.s32.totalorder %s37_s27, 4   ;;  %s1430_s24 = sld [smem:[#allocation20_spill]] }
 0x219   : > { %s1431_s25 = sld [smem:[#allocation18_spill]]  ;;  %s1433_s20 = smov %s1016_s3 }
 0x21a   : > { %s1432_s26 = sld [smem:[#allocation19_spill]]  ;;  %s1434_s3 = smov %s1020_s21 }
 0x21b   : > { %s1435_s21 = smov %s1192_s17  ;;  %s1436_s22 = smov %s1028_s23 }
 0x21c   :  { %36 = sbr.rel (!%p34_p7) target bundleno = 34 (0x22), region = 113 }
 0x21d   : > { %s1437_s23 = smov %s1429_s18 }
 0x221   :  { %597 = vsyncpa [#allocation9], 1 }
 0x222   :  { %599 = vsyncpa [#allocation9 + $0x1], 1 }
 0x223   :  { %600 = vsyncpa [#allocation10], 1 }
 0x224   :  { %602 = vsyncpa [#allocation10 + $0x1], 1 }

</bundles_post_ra>
